<compile_context>
chip_gen: v7x
topology: tpu7x:2x2x1
jax: 0.10.0
libtpu: 0.0.40
codegen_flags: <defaults>
</compile_context>

<pallas_src>
import jax
import jax.numpy as jnp
from jax.experimental import pallas as pl
from jax.experimental.pallas import tpu as pltpu


def _self_output_kernel(x_ref, res_ref, w_ref, b_ref, gamma_ref, beta_ref,
                        o_ref, *, eps):
    # x_ref:   (tm, H)  block of hidden_states (native dtype, e.g. bf16)
    # res_ref: (tm, H)  block of input_tensor (residual)
    # w_ref:   (H, H)   dense weight, pre-transposed so y = x @ w  (resident)
    # b_ref:   (1, H)   dense bias, f32
    # gamma/beta: (1, H) layernorm params, f32

    # Dense: MXU matmul in native dtype, f32 accumulation.
    y = jnp.dot(x_ref[...], w_ref[...], preferred_element_type=jnp.float32)

    # Bias + residual (f32 math from here on).
    y = y + b_ref[...]
    y = y + res_ref[...].astype(jnp.float32)

    # Dropout: identity at inference time.
    # TODO(synk): training-mode dropout (prng mask) not implemented.

    # LayerNorm over last axis (TF-style: eps inside sqrt), f32 math.
    u = jnp.mean(y, axis=-1, keepdims=True)
    d = y - u
    s = jnp.mean(d * d, axis=-1, keepdims=True)
    normed = d * jax.lax.rsqrt(s + eps)
    out = gamma_ref[...] * normed + beta_ref[...]

    o_ref[...] = out.astype(o_ref.dtype)


def prepare_params(w, b, gamma, beta):
    """One-time parameter prep (do NOT call per forward pass).

    w: [out, in] PyTorch Linear weight -> returned as [in, out] so the kernel
       computes y = x @ w_t, equivalent to x @ W^T.
    b, gamma, beta: [H] -> (1, H) f32.
    """
    H = w.shape[0]
    w_t = jnp.asarray(w).T                       # [in, out], native dtype
    b2 = jnp.asarray(b).reshape(1, H).astype(jnp.float32)
    g2 = jnp.asarray(gamma).reshape(1, H).astype(jnp.float32)
    be2 = jnp.asarray(beta).reshape(1, H).astype(jnp.float32)
    return w_t, b2, g2, be2


def _round_up(x, m):
    return (x + m - 1) // m * m


def bert_self_output(hidden_states, input_tensor, w_t, b2, g2, be2,
                     *, eps=1e-12, tm=256):
    """hidden_states/input_tensor: [B, S, H]; (w_t, b2, g2, be2) from
    prepare_params(). Weight stays resident in VMEM (fine for H <= ~1024)."""
    B, S, H = hidden_states.shape
    M = B * S

    # Pick an MXU-friendly row tile; pad M with zero rows if needed so the
    # grid divides evenly.  Padded rows are sliced off the output.
    tm_eff = min(tm, _round_up(M, 128))
    M_pad = _round_up(M, tm_eff)

    x2 = hidden_states.reshape(M, H)
    r2 = input_tensor.reshape(M, H)
    if M_pad != M:
        pad = ((0, M_pad - M), (0, 0))
        x2 = jnp.pad(x2, pad)
        r2 = jnp.pad(r2, pad)

    kernel = lambda *refs: _self_output_kernel(*refs, eps=eps)

    out = pl.pallas_call(
        kernel,
        out_shape=jax.ShapeDtypeStruct((M_pad, H), hidden_states.dtype),
        grid_spec=pltpu.PrefetchScalarGridSpec(
            num_scalar_prefetch=0,
            grid=(M_pad // tm_eff,),
            in_specs=[
                pl.BlockSpec((tm_eff, H), lambda i: (i, 0)),   # hidden_states
                pl.BlockSpec((tm_eff, H), lambda i: (i, 0)),   # residual
                pl.BlockSpec((H, H), lambda i: (0, 0)),        # weight (resident)
                pl.BlockSpec((1, H), lambda i: (0, 0)),        # bias
                pl.BlockSpec((1, H), lambda i: (0, 0)),        # gamma
                pl.BlockSpec((1, H), lambda i: (0, 0)),        # beta
            ],
            out_specs=pl.BlockSpec((tm_eff, H), lambda i: (i, 0)),
        ),
        compiler_params=pltpu.CompilerParams(
            dimension_semantics=("parallel",)),
    )(x2, r2, w_t, b2, g2, be2)

    if M_pad != M:
        out = out[:M]
    return out.reshape(B, S, H)
    # TODO(synk): for H >= 4096, add a K-tiling axis for the weight with an
    # f32 VMEM accumulator instead of keeping the full (H,H) block resident.


def _reference(hidden_states, input_tensor, w, b, gamma, beta, eps=1e-12):
    y = jnp.einsum("bsh,oh->bso", hidden_states.astype(jnp.float32),
                   w.astype(jnp.float32)) + b.astype(jnp.float32)
    y = y + input_tensor.astype(jnp.float32)
    u = jnp.mean(y, axis=-1, keepdims=True)
    s = jnp.mean((y - u) ** 2, axis=-1, keepdims=True)
    y = (y - u) / jnp.sqrt(s + eps)
    return gamma.astype(jnp.float32) * y + beta.astype(jnp.float32)


if __name__ == "__main__":
    B, S, H = 2, 8, 128   # batch, seq, hidden_size (small test shape)
    key = jax.random.PRNGKey(0)
    k1, k2, k3, k4 = jax.random.split(key, 4)

    hidden_states = jax.random.normal(k1, (B, S, H), dtype=jnp.float32)
    input_tensor = jax.random.normal(k2, (B, S, H), dtype=jnp.float32)

    # Deterministic synthetic parameters: dense weight/bias, LN gamma/beta.
    w = 0.02 * jax.random.normal(k3, (H, H), dtype=jnp.float32)   # [out, in]
    b = 0.01 * jax.random.normal(k4, (H,), dtype=jnp.float32)
    gamma = jnp.ones((H,), dtype=jnp.float32)
    beta = jnp.zeros((H,), dtype=jnp.float32)

    # --- f32 path ---
    params_f32 = prepare_params(w, b, gamma, beta)
    out = bert_self_output(hidden_states, input_tensor, *params_f32)
    out = jax.block_until_ready(out)
    ref = _reference(hidden_states, input_tensor, w, b, gamma, beta)
    assert out.shape == (B, S, H)
    assert jnp.allclose(out, ref, atol=1e-4, rtol=1e-4), "f32 mismatch vs reference"

    # --- bf16 path (bf16 activations/weight, f32 accumulate + f32 LN math) ---
    hs_bf16 = hidden_states.astype(jnp.bfloat16)
    in_bf16 = input_tensor.astype(jnp.bfloat16)
    params_bf16 = prepare_params(w.astype(jnp.bfloat16), b, gamma, beta)
    out_bf16 = bert_self_output(hs_bf16, in_bf16, *params_bf16)
    out_bf16 = jax.block_until_ready(out_bf16)
    assert out_bf16.dtype == jnp.bfloat16
    assert jnp.allclose(out_bf16.astype(jnp.float32), ref, atol=1e-1, rtol=1e-1), \
        "bf16 mismatch vs reference"

    print("KERNEL_OK")
</pallas_src>

<mosaic_0001>
module attributes {stable_mosaic.version = 11 : i64} {
  func.func @_lambda_(%arg0: i32, %arg1: memref<128x128xf32, #tpu.memory_space<vmem>>, %arg2: memref<128x128xf32, #tpu.memory_space<vmem>>, %arg3: memref<128x128xf32, #tpu.memory_space<vmem>>, %arg4: memref<1x128xf32, #tpu.memory_space<vmem>>, %arg5: memref<1x128xf32, #tpu.memory_space<vmem>>, %arg6: memref<1x128xf32, #tpu.memory_space<vmem>>, %arg7: memref<128x128xf32, #tpu.memory_space<vmem>>) attributes {dimension_semantics = [#tpu.dimension_semantics<parallel>], iteration_bounds = array<i64: 1>, scalar_prefetch = 0 : i64, scratch_operands = 0 : i64, tpu.core_type = #tpu.core_type<tc>, window_params = [{transform_indices = @transform_0, window_bounds = array<i64: 128, 128>}, {transform_indices = @transform_1, window_bounds = array<i64: 128, 128>}, {pipeline_mode = #tpu.pipeline_mode<synchronous>, transform_indices = @transform_2, window_bounds = array<i64: 128, 128>}, {pipeline_mode = #tpu.pipeline_mode<synchronous>, transform_indices = @transform_3, window_bounds = array<i64: 1, 128>}, {pipeline_mode = #tpu.pipeline_mode<synchronous>, transform_indices = @transform_4, window_bounds = array<i64: 1, 128>}, {pipeline_mode = #tpu.pipeline_mode<synchronous>, transform_indices = @transform_5, window_bounds = array<i64: 1, 128>}, {transform_indices = @transform_6, window_bounds = array<i64: 128, 128>}]} {
    %c0 = arith.constant 0 : index
    %c0_0 = arith.constant 0 : index
    %0 = vector.load %arg1[%c0, %c0_0] : memref<128x128xf32, #tpu.memory_space<vmem>>, vector<128x128xf32>
    %c0_1 = arith.constant 0 : index
    %c0_2 = arith.constant 0 : index
    %1 = vector.load %arg3[%c0_1, %c0_2] : memref<128x128xf32, #tpu.memory_space<vmem>>, vector<128x128xf32>
    %cst = arith.constant dense<0.000000e+00> : vector<128x128xf32>
    %2 = tpu.matmul %0, %1, %cst {dimension_numbers = #tpu.dot_dimension_numbers<[1], [0], [0], [1], [0, 0, 1, 1], [], []>} : vector<128x128xf32>, vector<128x128xf32>, vector<128x128xf32> -> vector<128x128xf32>
    %c0_3 = arith.constant 0 : index
    %c0_4 = arith.constant 0 : index
    %3 = vector.load %arg4[%c0_3, %c0_4] : memref<1x128xf32, #tpu.memory_space<vmem>>, vector<1x128xf32>
    %4 = vector.broadcast %3 : vector<1x128xf32> to vector<128x128xf32>
    %5 = arith.addf %2, %4 : vector<128x128xf32>
    %c0_5 = arith.constant 0 : index
    %c0_6 = arith.constant 0 : index
    %6 = vector.load %arg2[%c0_5, %c0_6] : memref<128x128xf32, #tpu.memory_space<vmem>>, vector<128x128xf32>
    %7 = arith.addf %5, %6 : vector<128x128xf32>
    %cst_7 = arith.constant dense<0.000000e+00> : vector<128xf32>
    %8 = vector.multi_reduction <add>, %7, %cst_7 [1] : vector<128x128xf32> to vector<128xf32>
    %9 = vector.shape_cast %8 : vector<128xf32> to vector<128x1xf32>
    %cst_8 = arith.constant 1.280000e+02 : f32
    %10 = vector.broadcast %cst_8 : f32 to vector<128x1xf32>
    %11 = arith.divf %9, %10 : vector<128x1xf32>
    %12 = vector.broadcast %11 : vector<128x1xf32> to vector<128x128xf32>
    %13 = arith.subf %7, %12 : vector<128x128xf32>
    %14 = arith.mulf %13, %13 : vector<128x128xf32>
    %cst_9 = arith.constant dense<0.000000e+00> : vector<128xf32>
    %15 = vector.multi_reduction <add>, %14, %cst_9 [1] : vector<128x128xf32> to vector<128xf32>
    %16 = vector.shape_cast %15 : vector<128xf32> to vector<128x1xf32>
    %cst_10 = arith.constant 1.280000e+02 : f32
    %17 = vector.broadcast %cst_10 : f32 to vector<128x1xf32>
    %18 = arith.divf %16, %17 : vector<128x1xf32>
    %cst_11 = arith.constant 9.99999996E-13 : f32
    %19 = vector.broadcast %cst_11 : f32 to vector<128x1xf32>
    %20 = arith.addf %18, %19 : vector<128x1xf32>
    %21 = math.rsqrt %20 : vector<128x1xf32>
    %22 = vector.broadcast %21 : vector<128x1xf32> to vector<128x128xf32>
    %23 = arith.mulf %13, %22 : vector<128x128xf32>
    %c0_12 = arith.constant 0 : index
    %c0_13 = arith.constant 0 : index
    %24 = vector.load %arg5[%c0_12, %c0_13] : memref<1x128xf32, #tpu.memory_space<vmem>>, vector<1x128xf32>
    %25 = vector.broadcast %24 : vector<1x128xf32> to vector<128x128xf32>
    %26 = arith.mulf %25, %23 : vector<128x128xf32>
    %c0_14 = arith.constant 0 : index
    %c0_15 = arith.constant 0 : index
    %27 = vector.load %arg6[%c0_14, %c0_15] : memref<1x128xf32, #tpu.memory_space<vmem>>, vector<1x128xf32>
    %28 = vector.broadcast %27 : vector<1x128xf32> to vector<128x128xf32>
    %29 = arith.addf %26, %28 : vector<128x128xf32>
    %c0_16 = arith.constant 0 : index
    %c0_17 = arith.constant 0 : index
    %30 = vector.load %arg7[%c0_16, %c0_17] : memref<128x128xf32, #tpu.memory_space<vmem>>, vector<128x128xf32>
    tpu.vector_store %arg7[%c0_16, %c0_17], %29 {strides = array<i32>} : memref<128x128xf32, #tpu.memory_space<vmem>>, vector<128x128xf32>,
    return
  }
  func.func @transform_0(%arg0: i32) -> (i32, i32) {
    %c0_i32 = arith.constant 0 : i32
    %c0_i32_0 = arith.constant 0 : i32
    return %arg0, %c0_i32 : i32, i32
  }
  func.func @transform_1(%arg0: i32) -> (i32, i32) {
    %c0_i32 = arith.constant 0 : i32
    %c0_i32_0 = arith.constant 0 : i32
    return %arg0, %c0_i32 : i32, i32
  }
  func.func @transform_2(%arg0: i32) -> (i32, i32) {
    %c0_i32 = arith.constant 0 : i32
    %c0_i32_0 = arith.constant 0 : i32
    %c0_i32_1 = arith.constant 0 : i32
    return %c0_i32, %c0_i32_0 : i32, i32
  }
  func.func @transform_3(%arg0: i32) -> (i32, i32) {
    %c0_i32 = arith.constant 0 : i32
    %c0_i32_0 = arith.constant 0 : i32
    %c0_i32_1 = arith.constant 0 : i32
    return %c0_i32, %c0_i32_0 : i32, i32
  }
  func.func @transform_4(%arg0: i32) -> (i32, i32) {
    %c0_i32 = arith.constant 0 : i32
    %c0_i32_0 = arith.constant 0 : i32
    %c0_i32_1 = arith.constant 0 : i32
    return %c0_i32, %c0_i32_0 : i32, i32
  }
  func.func @transform_5(%arg0: i32) -> (i32, i32) {
    %c0_i32 = arith.constant 0 : i32
    %c0_i32_0 = arith.constant 0 : i32
    %c0_i32_1 = arith.constant 0 : i32
    return %c0_i32, %c0_i32_0 : i32, i32
  }
  func.func @transform_6(%arg0: i32) -> (i32, i32) {
    %c0_i32 = arith.constant 0 : i32
    %c0_i32_0 = arith.constant 0 : i32
    return %arg0, %c0_i32 : i32, i32
  }
}

</mosaic_0001>

<bundles_post_ra>
// kernel: tpu_custom_call.1
= control target key start
LH: loop header
LB: loop body
LE: loop exit
PB: predicated region body
PF: predicated region fallthrough
CT: control target
= control target key end

     0   :  { %11 = vsyncpa [#allocation3], 0  ;;  %s1120_s0 = inlined_call_operand.hbm [shape: f32[128,128], index: 0, kind: input, shape index: {}]   ;;  %s1121_s1 = inlined_call_operand.hbm [shape: f32[128,128], index: 1, kind: input, shape index: {}]   ;;  %s1122_s2 = inlined_call_operand.hbm [shape: f32[128,128], index: 2, kind: input, shape index: {}]   ;;  %s1123_s3 = inlined_call_operand.vmem [shape: f32[1,128], index: 3, kind: input, shape index: {}]   ;;  %s1124_s4 = inlined_call_operand.vmem [shape: f32[1,128], index: 4, kind: input, shape index: {}]   ;;  %s1125_s5 = inlined_call_operand.vmem [shape: f32[1,128], index: 5, kind: input, shape index: {}]   ;;  %s1126_s6 = inlined_call_operand.hbm [shape: f32[128,128], index: 6, kind: output, shape index: {}]  }
   0x1   :  { %12 = vsyncpa [#allocation6], 0 }
   0x2   :  { %13 = vsyncpa [#allocation4], 0  ;;  %s809_s21 = smov [#allocation5]   ;;  %s810_s23 = smov [#allocation2]  }
   0x3   :  { %s31_s22 = sshll.u32 %s809_s21, 4  ;;  %s19_s24 = sshll.u32 %s810_s23, 4  ;;  %s32_s22 = int_to_ptr.vmem [resolvable:$true] %s31_s22  ;;  %s850_s24 = int_to_ptr.vmem [resolvable:$true] %s19_s24 }
   0x4   :  { %s715_s27 = scalar_lea.hbm %s1121_s1, 2048 }
   0x5   :  { %p716_p0 = scmp.ne.s32.totalorder %s1121_s1, %s715_s27  ;;  %p719_p1 = scmp.lt.u32.totalorder %s715_s27, %s1121_s1 }
   0x7   :  { %p721_p2 = pnand %p719_p1, %p716_p0 }
   0x9   :  { %724 = shalt.err (!%p721_p2)
}
   0xa   :  { %s725_s8 = scalar_lea.vmem %s32_s22, 2048  ;;  %p730_p4 = scmp.lt.s32.totalorder %s32_s22, %s32_s22 }
   0xb   :  { %p726_p3 = scmp.ne.s32.totalorder %s32_s22, %s725_s8  ;;  %p731_p5 = scmp.lt.s32.totalorder %s725_s8, %s725_s8 }
   0xd   :  { %p732_p6 = por %p731_p5, %p730_p4 }
   0xf   :  { %p733_p7 = pnand %p732_p6, %p726_p3 }
  0x11   :  { %736 = shalt.err (!%p733_p7)
}
  0x12   :  { %s811_s9 = smov 128   ;;  %s812_s10 = smov 8  }
  0x13   :  { %37 = dma.hbm_to_vmem [thread:$0]  %s1121_s1, 2048, %s32_s22, [#allocation6], %s811_s9, %s811_s9, %s812_s10  }
  0x14   :  { %s737_s15 = scalar_lea.hbm %s1120_s0, 2048 }
  0x15   :  { %p738_p8 = scmp.ne.s32.totalorder %s1120_s0, %s737_s15  ;;  %p741_p9 = scmp.lt.u32.totalorder %s737_s15, %s1120_s0 }
  0x17   :  { %p743_p10 = pnand %p741_p9, %p738_p8 }
  0x19   :  { %746 = shalt.err (!%p743_p10)
}
  0x1a   :  { %s747_s20 = scalar_lea.vmem %s850_s24, 2048  ;;  %p752_p12 = scmp.lt.s32.totalorder %s850_s24, %s850_s24 }
  0x1b   :  { %p748_p11 = scmp.ne.s32.totalorder %s850_s24, %s747_s20  ;;  %p753_p13 = scmp.lt.s32.totalorder %s747_s20, %s747_s20 }
  0x1d   :  { %p754_p0 = por %p753_p13, %p752_p12 }
  0x1f   :  { %p755_p1 = pnand %p754_p0, %p748_p11 }
  0x21   :  { %758 = shalt.err (!%p755_p1)
}
  0x22   :  { %25 = dma.hbm_to_vmem [thread:$0]  %s1120_s0, 2048, %s850_s24, [#allocation3], %s811_s9, %s811_s9, %s812_s10  }
  0x23   :  { %s813_s22 = smov [#allocation7]   ;;  %s759_s27 = scalar_lea.hbm %s1122_s2, 2048 }
  0x24   :  { %s43_s23 = sshll.u32 %s813_s22, 4  ;;  %p760_p2 = scmp.ne.s32.totalorder %s1122_s2, %s759_s27  ;;  %s44_s23 = int_to_ptr.vmem [resolvable:$true] %s43_s23 }
  0x25   :  { %p763_p3 = scmp.lt.u32.totalorder %s759_s27, %s1122_s2 }
  0x27   :  { %p765_p4 = pnand %p763_p3, %p760_p2 }
  0x29   :  { %768 = shalt.err (!%p765_p4)
}
  0x2a   :  { %s769_s8 = scalar_lea.vmem %s44_s23, 2048  ;;  %p774_p6 = scmp.lt.s32.totalorder %s44_s23, %s44_s23 }
  0x2b   :  { %p770_p5 = scmp.ne.s32.totalorder %s44_s23, %s769_s8  ;;  %p775_p7 = scmp.lt.s32.totalorder %s769_s8, %s769_s8 }
  0x2d   :  { %p776_p8 = por %p775_p7, %p774_p6 }
  0x2f   :  { %p777_p9 = pnand %p776_p8, %p770_p5 }
  0x31   :  { %780 = shalt.err (!%p777_p9)
}
  0x32   :  { %49 = dma.hbm_to_vmem [thread:$0]  %s1122_s2, 2048, %s44_s23, [#allocation6], %s811_s9, %s811_s9, %s812_s10  }
  0x33   :  { %803 = dma.done.wait [#allocation3], 2048  }
  0x34   :  { %804 = vsyncadd [#allocation3], 4294965248 }
  0x35   :  { %805 = dma.done.wait [#allocation6], 4096  }
  0x36   :  { %806 = vsyncadd [#allocation6], 4294963200  ;;  %v81_v0 = vld [vmem:[#allocation7] sm:$0xff]  ;;  %v82_v1 = vld [vmem:[#allocation7 + $0x8] sm:$0xff] }
  0x37   :  { %v83_v2 = vld [vmem:[#allocation7 + $0x10] sm:$0xff]  ;;  %v629_v3 = vpack.c.bf16 %v82_v1, %v81_v0  ;;  %v84_v4 = vld [vmem:[#allocation7 + $0x18] sm:$0xff]  ;;  %v85_v6 = vld [vmem:[#allocation7 + $0x20] sm:$0xff] }
  0x38   :  { %v633_v5 = vpack.c.bf16 %v84_v4, %v83_v2  ;;  %v86_v7 = vld [vmem:[#allocation7 + $0x28] sm:$0xff]  ;;  %v65_v9 = vld [vmem:[#allocation2] sm:$0xff]  ;;  %v87_v11 = vld [vmem:[#allocation7 + $0x30] sm:$0xff] }
  0x39   :  { %630 = vmatprep.subr.bf16.mxu0 %v629_v3  ;;  %661 = vmatprep.subr.bf16.mxu1 %v629_v3  ;;  %v637_v8 = vpack.c.bf16 %v86_v7, %v85_v6  ;;  %v73_v10 = vld [vmem:[#allocation2 + $0x40] sm:$0xff]  ;;  %v88_v12 = vld [vmem:[#allocation7 + $0x38] sm:$0xff]  ;;  %v90_v15 = vld [vmem:[#allocation7 + $0x48] sm:$0xff] }
  0x3a   :  { %632 = vmatpush3.bf16.msra.mxu0 %v629_v3  ;;  %669 = vmatpush3.bf16.msra.mxu1 %v629_v3  ;;  %v641_v13 = vpack.c.bf16 %v88_v12, %v87_v11  ;;  %v89_v14 = vld [vmem:[#allocation7 + $0x40] sm:$0xff]  ;;  %v91_v17 = vld [vmem:[#allocation7 + $0x50] sm:$0xff]  ;;  %v92_v18 = vld [vmem:[#allocation7 + $0x58] sm:$0xff] }
  0x3b   :  { %634 = vmatprep.subr.bf16.mxu0 %v633_v5  ;;  %662 = vmatprep.subr.bf16.mxu1 %v633_v5  ;;  %v645_v16 = vpack.c.bf16 %v90_v15, %v89_v14  ;;  %v649_v19 = vpack.c.bf16 %v92_v18, %v91_v17  ;;  %v93_v20 = vld [vmem:[#allocation7 + $0x60] sm:$0xff]  ;;  %v94_v21 = vld [vmem:[#allocation7 + $0x68] sm:$0xff]  ;;  %v95_v23 = vld [vmem:[#allocation7 + $0x70] sm:$0xff] }
  0x3c   :  { %605 = vmatprep.mubr.f32.mxu0 %v65_v9  ;;  %617 = vmatprep.mubr.f32.mxu1 %v73_v10  ;;  %v653_v22 = vpack.c.bf16 %v94_v21, %v93_v20  ;;  %v96_v24 = vld [vmem:[#allocation7 + $0x78] sm:$0xff]  ;;  %v66_v26 = vld [vmem:[#allocation2 + $0x8] sm:$0xff]  ;;  %v67_v28 = vld [vmem:[#allocation2 + $0x10] sm:$0xff] }
  0x3d   :  { %v657_v25 = vpack.c.bf16 %v96_v24, %v95_v23  ;;  %v74_v27 = vld [vmem:[#allocation2 + $0x48] sm:$0xff]  ;;  %v75_v29 = vld [vmem:[#allocation2 + $0x50] sm:$0xff]  ;;  %v68_v30 = vld [vmem:[#allocation2 + $0x18] sm:$0xff] }
  0x3e   :  { %636 = vmatpush3.bf16.msra.mxu0 %v633_v5  ;;  %670 = vmatpush3.bf16.msra.mxu1 %v633_v5  ;;  %v76_v31 = vld [vmem:[#allocation2 + $0x58] sm:$0xff]  ;;  %v69_v32 = vld [vmem:[#allocation2 + $0x20] sm:$0xff]  ;;  %v70_v34 = vld [vmem:[#allocation2 + $0x28] sm:$0xff] }
  0x3f   :  { %638 = vmatprep.subr.bf16.mxu0 %v637_v8  ;;  %663 = vmatprep.subr.bf16.mxu1 %v637_v8  ;;  %v77_v33 = vld [vmem:[#allocation2 + $0x60] sm:$0xff]  ;;  %v78_v35 = vld [vmem:[#allocation2 + $0x68] sm:$0xff]  ;;  %v71_v36 = vld [vmem:[#allocation2 + $0x30] sm:$0xff] }
  0x40   :  { %v79_v37 = vld [vmem:[#allocation2 + $0x70] sm:$0xff]  ;;  %v72_v38 = vld [vmem:[#allocation2 + $0x38] sm:$0xff]  ;;  %v905_v40 = vld [vmem:[%s1123_s3] ss:$0 sm:$0xff] }
  0x41   :  { %v80_v39 = vld [vmem:[#allocation2 + $0x78] sm:$0xff]  ;;  %v258_v43 = vld [vmem:[#allocation5 + $0x48] sm:$0xff]  ;;  %v249_v55 = vld [vmem:[#allocation5] sm:$0xff] }
  0x42   :  { %640 = vmatpush3.bf16.msra.mxu0 %v637_v8  ;;  %671 = vmatpush3.bf16.msra.mxu1 %v637_v8  ;;  %v250_v44 = vld [vmem:[#allocation5 + $0x8] sm:$0xff]  ;;  %v252_v54 = vld [vmem:[#allocation5 + $0x18] sm:$0xff]  ;;  %v257_v0 = vld [vmem:[#allocation5 + $0x40] sm:$0xff] }
  0x43   :  { %642 = vmatprep.subr.bf16.mxu0 %v641_v13  ;;  %664 = vmatprep.subr.bf16.mxu1 %v641_v13  ;;  %v260_v60 = vld [vmem:[#allocation5 + $0x58] sm:$0xff]  ;;  %v251_v9 = vld [vmem:[#allocation5 + $0x10] sm:$0xff]  ;;  %v254_v17 = vld [vmem:[#allocation5 + $0x28] sm:$0xff] }
  0x44   :  { %v259_v10 = vld [vmem:[#allocation5 + $0x50] sm:$0xff]  ;;  %v253_v18 = vld [vmem:[#allocation5 + $0x20] sm:$0xff] }
  0x46   :  { %644 = vmatpush3.bf16.msra.mxu0 %v641_v13  ;;  %672 = vmatpush3.bf16.msra.mxu1 %v641_v13 }
  0x47   :  { %646 = vmatprep.subr.bf16.mxu0 %v645_v16  ;;  %665 = vmatprep.subr.bf16.mxu1 %v645_v16 }
  0x4a   :  { %648 = vmatpush3.bf16.msra.mxu0 %v645_v16  ;;  %673 = vmatpush3.bf16.msra.mxu1 %v645_v16 }
  0x4b   :  { %650 = vmatprep.subr.bf16.mxu0 %v649_v19  ;;  %666 = vmatprep.subr.bf16.mxu1 %v649_v19 }
  0x4e   :  { %652 = vmatpush3.bf16.msra.mxu0 %v649_v19  ;;  %674 = vmatpush3.bf16.msra.mxu1 %v649_v19 }
  0x4f   :  { %654 = vmatprep.subr.bf16.mxu0 %v653_v22  ;;  %667 = vmatprep.subr.bf16.mxu1 %v653_v22 }
  0x52   :  { %656 = vmatpush3.bf16.msra.mxu0 %v653_v22  ;;  %675 = vmatpush3.bf16.msra.mxu1 %v653_v22 }
  0x53   :  { %658 = vmatprep.subr.bf16.mxu0 %v657_v25  ;;  %668 = vmatprep.subr.bf16.mxu1 %v657_v25 }
  0x56   :  { %660 = vmatpush3.bf16.msra.mxu0 %v657_v25  ;;  %676 = vmatpush3.bf16.msra.mxu1 %v657_v25  ;;  %v262_v25 = vld [vmem:[#allocation5 + $0x68] sm:$0xff] }
  0x59   :  { %606 = vmatmul.mubr.f32.vlgmr.msra.gmra.mrb[0].mxu0 %v66_v26  ;;  %618 = vmatmul.mubr.f32.vlgmr.msra.gmra.mrb[0].mxu1 %v74_v27  ;;  %v261_v26 = vld [vmem:[#allocation5 + $0x60] sm:$0xff] }
  0x5a   :  { %608 = vmatprep.mubr.f32.mxu0 %v67_v28  ;;  %620 = vmatprep.mubr.f32.mxu1 %v75_v29 }
  0x5d   :  { %609 = vmatmul.mubr.f32.gmra.mrb[2].mxu0 %v68_v30  ;;  %621 = vmatmul.mubr.f32.gmra.mrb[2].mxu1 %v76_v31  ;;  %v256_v31 = vld [vmem:[#allocation5 + $0x38] sm:$0xff] }
  0x5e   :  { %611 = vmatprep.mubr.f32.mxu0 %v69_v32  ;;  %623 = vmatprep.mubr.f32.mxu1 %v77_v33  ;;  %v255_v32 = vld [vmem:[#allocation5 + $0x30] sm:$0xff] }
  0x61   :  { %612 = vmatmul.mubr.f32.gmra.mrb[4].mxu0 %v70_v34  ;;  %624 = vmatmul.mubr.f32.gmra.mrb[4].mxu1 %v78_v35 }
  0x62   :  { %614 = vmatprep.mubr.f32.mxu0 %v71_v36  ;;  %626 = vmatprep.mubr.f32.mxu1 %v79_v37  ;;  %v264_v37 = vld [vmem:[#allocation5 + $0x78] sm:$0xff] }
  0x65   :  { %615 = vmatmul.mubr.f32.gmra.mrb[6].mxu0 %v72_v38  ;;  %627 = vmatmul.mubr.f32.gmra.mrb[6].mxu1 %v80_v39  ;;  %v263_v38 = vld [vmem:[#allocation5 + $0x70] sm:$0xff] }
 0x12c   :  { %v607_v41 = vpop.f32.mrb[0].mxu0  ;;  %v619_v42 = vpop.f32.mrb[0].mxu1 }
 0x12d   :  { %v176_v45 = vadd.f32 %v607_v41, %v905_v40  ;;  %v216_v46 = vadd.f32 %v619_v42, %v905_v40  ;;  %v170_v47 = vpop.f32.mrb[1].mxu0  ;;  %v210_v48 = vpop.f32.mrb[1].mxu1 }
 0x12e   :  { %v171_v49 = vadd.f32 %v905_v40, %v170_v47  ;;  %v211_v61 = vadd.f32 %v905_v40, %v210_v48 }
 0x12f   :  { %v910_v50 = vadd.f32 %v258_v43, %v216_v46  ;;  %v912_v51 = vadd.f32 %v250_v44, %v176_v45 }
 0x130   :  { %v610_v52 = vpop.f32.mrb[2].mxu0  ;;  %v622_v53 = vpop.f32.mrb[2].mxu1  ;;  %v921_v63 = vadd.f32 %v249_v55, %v171_v49  ;;  %v929_v8 = vadd.f32 %v257_v0, %v211_v61 }
 0x131   :  { %v186_v56 = vadd.f32 %v610_v52, %v905_v40  ;;  %299 = vadd.xlane.f32.xlu1 %v910_v50  ;;  %283 = vadd.xlane.f32.xlu0 %v912_v51  ;;  %v180_v57 = vpop.f32.mrb[3].mxu0  ;;  %v226_v58 = vadd.f32 %v622_v53, %v905_v40  ;;  %v220_v59 = vpop.f32.mrb[3].mxu1 }
 0x132   :  { %v181_v6 = vadd.f32 %v905_v40, %v180_v57  ;;  %v221_v7 = vadd.f32 %v905_v40, %v220_v59 }
 0x133   :  { %v919_v62 = vadd.f32 %v252_v54, %v186_v56  ;;  %v925_v3 = vadd.f32 %v260_v60, %v226_v58 }
 0x134   :  { %v613_v1 = vpop.f32.mrb[4].mxu0  ;;  %v625_v2 = vpop.f32.mrb[4].mxu1  ;;  %v267_v19 = vadd.f32 %v251_v9, %v181_v6  ;;  %v935_v20 = vadd.f32 %v259_v10, %v221_v7 }
 0x135   :  { %287 = vadd.xlane.f32.xlu1 %v919_v62  ;;  %281 = vadd.xlane.f32.xlu0 %v921_v63  ;;  %v190_v4 = vpop.f32.mrb[5].mxu0  ;;  %v230_v5 = vpop.f32.mrb[5].mxu1  ;;  %v196_v13 = vadd.f32 %v613_v1, %v905_v40  ;;  %v236_v21 = vadd.f32 %v625_v2, %v905_v40 }
 0x136   :  { %v191_v14 = vadd.f32 %v905_v40, %v190_v4  ;;  %v231_v22 = vadd.f32 %v905_v40, %v230_v5 }
 0x137   :  { %v940_v23 = vadd.f32 %v254_v17, %v196_v13  ;;  %v944_v27 = vadd.f32 %v262_v25, %v236_v21 }
 0x138   :  { %v616_v11 = vpop.f32.mrb[6].mxu0  ;;  %v628_v12 = vpop.f32.mrb[6].mxu1  ;;  %v942_v24 = vadd.f32 %v253_v18, %v191_v14  ;;  %v950_v30 = vadd.f32 %v261_v26, %v231_v22 }
 0x139   :  { %303 = vadd.xlane.f32.xlu1 %v925_v3  ;;  %297 = vadd.xlane.f32.xlu0 %v929_v8  ;;  %v200_v15 = vpop.f32.mrb[7].mxu0  ;;  %v240_v16 = vpop.f32.mrb[7].mxu1  ;;  %v206_v28 = vadd.f32 %v616_v11, %v905_v40  ;;  %v246_v33 = vadd.f32 %v628_v12, %v905_v40 }
 0x13a   :  { %v201_v29 = vadd.f32 %v905_v40, %v200_v15  ;;  %v241_v34 = vadd.f32 %v905_v40, %v240_v16 }
 0x13b   :  { %v956_v35 = vadd.f32 %v256_v31, %v206_v28  ;;  %v962_v39 = vadd.f32 %v264_v37, %v246_v33 }
 0x13c   :  { %v958_v36 = vadd.f32 %v255_v32, %v201_v29  ;;  %v964_v41 = vadd.f32 %v263_v38, %v241_v34 }
 0x13d   :  { %285 = vadd.xlane.f32.xlu1 %v267_v19  ;;  %301 = vadd.xlane.f32.xlu0 %v935_v20 }
 0x141   :  { %291 = vadd.xlane.f32.xlu1 %v940_v23  ;;  %289 = vadd.xlane.f32.xlu0 %v942_v24 }
 0x145   :  { %307 = vadd.xlane.f32.xlu1 %v944_v27  ;;  %305 = vadd.xlane.f32.xlu0 %v950_v30 }
 0x149   :  { %295 = vadd.xlane.f32.xlu1 %v956_v35  ;;  %293 = vadd.xlane.f32.xlu0 %v958_v36 }
 0x14d   :  { %311 = vadd.xlane.f32.xlu1 %v962_v39  ;;  %309 = vadd.xlane.f32.xlu0 %v964_v41 }
 0x1be   :  { %v300_v42 = vpop.xlane.xlu1 %299  ;;  %v284_v40 = vpop.xlane.xlu0 %283 }
 0x1bf   :  { %v323_v43 = vmul.f32 0.0078125, %v300_v42  ;;  %v315_v44 = vmul.f32 0.0078125, %v284_v40 }
 0x1c1   :  { %v969_v45 = vsub.f32 %v912_v51, %v315_v44  ;;  %v972_v48 = vsub.f32 %v910_v50, %v323_v43 }
 0x1c2   :  { %v288_v46 = vpop.xlane.xlu1 %287  ;;  %v282_v47 = vpop.xlane.xlu0 %281 }
 0x1c3   :  { %v317_v49 = vmul.f32 0.0078125, %v288_v46  ;;  %v314_v52 = vmul.f32 0.0078125, %v282_v47  ;;  %v347_v53 = vmul.f32 %v969_v45, %v969_v45  ;;  %v355_v50 = vmul.f32 %v972_v48, %v972_v48 }
 0x1c5   :  { %v977_v54 = vsub.f32 %v921_v63, %v314_v52  ;;  %364 = vadd.xlane.f32.xlu1 %v347_v53  ;;  %v980_v55 = vsub.f32 %v919_v62, %v317_v49 }
 0x1c6   :  { %v304_v56 = vpop.xlane.xlu1 %303  ;;  %v298_v51 = vpop.xlane.xlu0 %297 }
 0x1c7   :  { %v325_v57 = vmul.f32 0.0078125, %v304_v56  ;;  %v322_v58 = vmul.f32 0.0078125, %v298_v51  ;;  %v346_v59 = vmul.f32 %v977_v54, %v977_v54  ;;  %v349_v62 = vmul.f32 %v980_v55, %v980_v55 }
 0x1c9   :  { %v987_v60 = vsub.f32 %v929_v8, %v322_v58  ;;  %380 = vadd.xlane.f32.xlu1 %v355_v50  ;;  %362 = vadd.xlane.f32.xlu0 %v346_v59  ;;  %v992_v0 = vsub.f32 %v925_v3, %v325_v57 }
 0x1ca   :  { %v286_v61 = vpop.xlane.xlu1 %285  ;;  %v302_v63 = vpop.xlane.xlu0 %301 }
 0x1cb   :  { %v316_v1 = vmul.f32 0.0078125, %v286_v61  ;;  %v324_v2 = vmul.f32 0.0078125, %v302_v63  ;;  %v354_v4 = vmul.f32 %v987_v60, %v987_v60  ;;  %v357_v3 = vmul.f32 %v992_v0, %v992_v0 }
 0x1cd   :  { %v996_v5 = vsub.f32 %v267_v19, %v316_v1  ;;  %368 = vadd.xlane.f32.xlu1 %v349_v62  ;;  %378 = vadd.xlane.f32.xlu0 %v354_v4  ;;  %v999_v6 = vsub.f32 %v935_v20, %v324_v2  ;;  %v1050_v4 = vld [vmem:[%s1124_s4] ss:$0 sm:$0xff]  ;;  %s814_s4 = smov [#allocation8]  }
 0x1ce   :  { %v292_v7 = vpop.xlane.xlu1 %291  ;;  %v290_v8 = vpop.xlane.xlu0 %289 }
 0x1cf   :  { %v319_v9 = vmul.f32 0.0078125, %v292_v7  ;;  %v318_v10 = vmul.f32 0.0078125, %v290_v8  ;;  %v348_v11 = vmul.f32 %v996_v5, %v996_v5  ;;  %v356_v15 = vmul.f32 %v999_v6, %v999_v6 }
 0x1d1   :  { %v1006_v12 = vsub.f32 %v940_v23, %v319_v9  ;;  %384 = vadd.xlane.f32.xlu1 %v357_v3  ;;  %366 = vadd.xlane.f32.xlu0 %v348_v11  ;;  %v1011_v16 = vsub.f32 %v942_v24, %v318_v10  ;;  %v1056_v11 = vld [vmem:[%s1125_s5] ss:$0 sm:$0xff]  ;;  %s525_s5 = sshll.u32 %s814_s4, 4  ;;  %s526_s5 = int_to_ptr.vmem [resolvable:$true] %s525_s5 }
 0x1d2   :  { %v308_v13 = vpop.xlane.xlu1 %307  ;;  %v306_v14 = vpop.xlane.xlu0 %305  ;;  %s781_s15 = scalar_lea.vmem %s526_s5, 2048  ;;  %p786_p11 = scmp.lt.s32.totalorder %s526_s5, %s526_s5 }
 0x1d3   :  { %v327_v17 = vmul.f32 0.0078125, %v308_v13  ;;  %v326_v18 = vmul.f32 0.0078125, %v306_v14  ;;  %v351_v19 = vmul.f32 %v1006_v12, %v1006_v12  ;;  %v350_v28 = vmul.f32 %v1011_v16, %v1011_v16  ;;  %p782_p10 = scmp.ne.s32.totalorder %s526_s5, %s781_s15  ;;  %p787_p12 = scmp.lt.s32.totalorder %s781_s15, %s781_s15 }
 0x1d5   :  { %v1016_v20 = vsub.f32 %v944_v27, %v327_v17  ;;  %372 = vadd.xlane.f32.xlu1 %v351_v19  ;;  %382 = vadd.xlane.f32.xlu0 %v356_v15  ;;  %v1019_v21 = vsub.f32 %v950_v30, %v326_v18  ;;  %p788_p13 = por %p787_p12, %p786_p11 }
 0x1d6   :  { %v296_v22 = vpop.xlane.xlu1 %295  ;;  %v294_v23 = vpop.xlane.xlu0 %293 }
 0x1d7   :  { %v321_v25 = vmul.f32 0.0078125, %v296_v22  ;;  %v320_v26 = vmul.f32 0.0078125, %v294_v23  ;;  %v359_v24 = vmul.f32 %v1016_v20, %v1016_v20  ;;  %v358_v30 = vmul.f32 %v1019_v21, %v1019_v21  ;;  %p789_p0 = pnand %p788_p13, %p782_p10 }
 0x1d9   :  { %v1026_v29 = vsub.f32 %v956_v35, %v321_v25  ;;  %388 = vadd.xlane.f32.xlu1 %v359_v24  ;;  %370 = vadd.xlane.f32.xlu0 %v350_v28  ;;  %v1031_v32 = vsub.f32 %v958_v36, %v320_v26 }
 0x1da   :  { %v312_v27 = vpop.xlane.xlu1 %311  ;;  %v310_v31 = vpop.xlane.xlu0 %309 }
 0x1db   :  { %v329_v33 = vmul.f32 0.0078125, %v312_v27  ;;  %v328_v34 = vmul.f32 0.0078125, %v310_v31  ;;  %v353_v37 = vmul.f32 %v1026_v29, %v1026_v29  ;;  %v352_v36 = vmul.f32 %v1031_v32, %v1031_v32 }
 0x1dd   :  { %v1036_v38 = vsub.f32 %v962_v39, %v329_v33  ;;  %376 = vadd.xlane.f32.xlu1 %v353_v37  ;;  %386 = vadd.xlane.f32.xlu0 %v358_v30  ;;  %v1039_v35 = vsub.f32 %v964_v41, %v328_v34 }
 0x1df   :  { %v361_v42 = vmul.f32 %v1036_v38, %v1036_v38  ;;  %v360_v40 = vmul.f32 %v1039_v35, %v1039_v35 }
 0x1e1   :  { %392 = vadd.xlane.f32.xlu1 %v361_v42  ;;  %374 = vadd.xlane.f32.xlu0 %v352_v36 }
 0x1e5   :  { %390 = vadd.xlane.f32.xlu0 %v360_v40 }
 0x252   :  { %v365_v43 = vpop.xlane.xlu1 %364 }
 0x253   :  { %v395_v39 = vmul.f32 0.0078125, %v365_v43 }
 0x255   :  { %v411_v44 = vadd.f32 1e-12, %v395_v39 }
 0x256   :  { %v381_v46 = vpop.xlane.xlu1 %380  ;;  %v363_v47 = vpop.xlane.xlu0 %362 }
 0x257   :  { %683 = vrsqrt.f32 %v411_v44  ;;  %v403_v41 = vmul.f32 0.0078125, %v381_v46  ;;  %v394_v49 = vmul.f32 0.0078125, %v363_v47 }
 0x259   :  { %v419_v52 = vadd.f32 1e-12, %v403_v41  ;;  %v410_v53 = vadd.f32 1e-12, %v394_v49 }
 0x25a   :  { %v369_v56 = vpop.xlane.xlu1 %368  ;;  %v379_v51 = vpop.xlane.xlu0 %378 }
 0x25b   :  { %685 = vrsqrt.f32 %v419_v52  ;;  %v397_v57 = vmul.f32 0.0078125, %v369_v56  ;;  %v402_v58 = vmul.f32 0.0078125, %v379_v51 }
 0x25c   :  { %687 = vrsqrt.f32 %v410_v53 }
 0x25d   :  { %v413_v50 = vadd.f32 1e-12, %v397_v57  ;;  %v418_v59 = vadd.f32 1e-12, %v402_v58 }
 0x25e   :  { %v385_v61 = vpop.xlane.xlu1 %384  ;;  %v367_v63 = vpop.xlane.xlu0 %366 }
 0x25f   :  { %689 = vrsqrt.f32 %v413_v50  ;;  %v405_v62 = vmul.f32 0.0078125, %v385_v61  ;;  %v396_v1 = vmul.f32 0.0078125, %v367_v63 }
 0x260   :  { %691 = vrsqrt.f32 %v418_v59 }
 0x261   :  { %v684_v2 = vpop.eup %683  ;;  %v421_v7 = vadd.f32 1e-12, %v405_v62  ;;  %v412_v8 = vadd.f32 1e-12, %v396_v1 }
 0x262   :  { %v443_v9 = vmul.f32 %v684_v2, %v969_v45  ;;  %v373_v10 = vpop.xlane.xlu1 %372  ;;  %v383_v3 = vpop.xlane.xlu0 %382 }
 0x263   :  { %693 = vrsqrt.f32 %v421_v7  ;;  %v399_v13 = vmul.f32 0.0078125, %v373_v10  ;;  %v404_v14 = vmul.f32 0.0078125, %v383_v3 }
 0x264   :  { %v466_v15 = vmul.f32 %v1050_v4, %v443_v9  ;;  %695 = vrsqrt.f32 %v412_v8 }
 0x265   :  { %v686_v17 = vpop.eup %685  ;;  %v415_v18 = vadd.f32 1e-12, %v399_v13  ;;  %v420_v19 = vadd.f32 1e-12, %v404_v14 }
 0x266   :  { %v688_v22 = vpop.eup %687  ;;  %v489_v23 = vadd.f32 %v1056_v11, %v466_v15  ;;  %v451_v45 = vmul.f32 %v686_v17, %v972_v48  ;;  %v389_v25 = vpop.xlane.xlu1 %388 }
 0x267   :  { %v371_v26 = vpop.xlane.xlu0 %370  ;;  %v442_v24 = vmul.f32 %v688_v22, %v977_v54  ;;  %697 = vrsqrt.f32 %v415_v18  ;;  %v407_v28 = vmul.f32 0.0078125, %v389_v25 }
 0x268   :  { %v398_v27 = vmul.f32 0.0078125, %v371_v26  ;;  %505 = vst [vmem:[#allocation8 + $0x8] sm:$0xff] %v489_v23  ;;  %v474_v31 = vmul.f32 %v1050_v4, %v451_v45  ;;  %699 = vrsqrt.f32 %v420_v19 }
 0x269   :  { %v690_v30 = vpop.eup %689  ;;  %v465_v33 = vmul.f32 %v1050_v4, %v442_v24  ;;  %v423_v34 = vadd.f32 1e-12, %v407_v28 }
 0x26a   :  { %v414_v37 = vadd.f32 1e-12, %v398_v27  ;;  %v692_v42 = vpop.eup %691  ;;  %v497_v36 = vadd.f32 %v1056_v11, %v474_v31  ;;  %v445_v48 = vmul.f32 %v690_v30, %v980_v55  ;;  %v377_v40 = vpop.xlane.xlu1 %376 }
 0x26b   :  { %v387_v43 = vpop.xlane.xlu0 %386  ;;  %v488_v54 = vadd.f32 %v1056_v11, %v465_v33  ;;  %v450_v39 = vmul.f32 %v692_v42, %v987_v60  ;;  %701 = vrsqrt.f32 %v423_v34  ;;  %v401_v44 = vmul.f32 0.0078125, %v377_v40 }
 0x26c   :  { %513 = vst [vmem:[#allocation8 + $0x48] sm:$0xff] %v497_v36  ;;  %v468_v46 = vmul.f32 %v1050_v4, %v445_v48  ;;  %703 = vrsqrt.f32 %v414_v37  ;;  %v406_v47 = vmul.f32 0.0078125, %v387_v43 }
 0x26d   :  { %v694_v41 = vpop.eup %693  ;;  %504 = vst [vmem:[#allocation8] sm:$0xff] %v488_v54  ;;  %v473_v49 = vmul.f32 %v1050_v4, %v450_v39  ;;  %v417_v52 = vadd.f32 1e-12, %v401_v44 }
 0x26e   :  { %v696_v53 = vpop.eup %695  ;;  %v491_v55 = vadd.f32 %v1056_v11, %v468_v46  ;;  %v453_v56 = vmul.f32 %v694_v41, %v992_v0  ;;  %v422_v51 = vadd.f32 1e-12, %v406_v47  ;;  %v393_v57 = vpop.xlane.xlu1 %392 }
 0x26f   :  { %v375_v60 = vpop.xlane.xlu0 %374  ;;  %v496_v58 = vadd.f32 %v1056_v11, %v473_v49  ;;  %v444_v50 = vmul.f32 %v696_v53, %v996_v5  ;;  %705 = vrsqrt.f32 %v417_v52  ;;  %v409_v59 = vmul.f32 0.0078125, %v393_v57 }
 0x270   :  { %507 = vst [vmem:[#allocation8 + $0x18] sm:$0xff] %v491_v55  ;;  %v476_v61 = vmul.f32 %v1050_v4, %v453_v56  ;;  %707 = vrsqrt.f32 %v422_v51  ;;  %v400_v63 = vmul.f32 0.0078125, %v375_v60 }
 0x271   :  { %v698_v62 = vpop.eup %697  ;;  %512 = vst [vmem:[#allocation8 + $0x40] sm:$0xff] %v496_v58  ;;  %v467_v1 = vmul.f32 %v1050_v4, %v444_v50  ;;  %v425_v2 = vadd.f32 1e-12, %v409_v59 }
 0x272   :  { %v700_v0 = vpop.eup %699  ;;  %v499_v7 = vadd.f32 %v1056_v11, %v476_v61  ;;  %v447_v8 = vmul.f32 %v698_v62, %v1006_v12  ;;  %v416_v9 = vadd.f32 1e-12, %v400_v63 }
 0x273   :  { %v391_v10 = vpop.xlane.xlu0 %390  ;;  %v490_v5 = vadd.f32 %v1056_v11, %v467_v1  ;;  %v452_v3 = vmul.f32 %v700_v0, %v999_v6  ;;  %709 = vrsqrt.f32 %v425_v2 }
 0x274   :  { %v408_v13 = vmul.f32 0.0078125, %v391_v10  ;;  %515 = vst [vmem:[#allocation8 + $0x58] sm:$0xff] %v499_v7  ;;  %v470_v14 = vmul.f32 %v1050_v4, %v447_v8  ;;  %711 = vrsqrt.f32 %v416_v9 }
 0x275   :  { %v702_v15 = vpop.eup %701  ;;  %506 = vst [vmem:[#allocation8 + $0x10] sm:$0xff] %v490_v5  ;;  %v475_v17 = vmul.f32 %v1050_v4, %v452_v3 }
 0x276   :  { %v424_v18 = vadd.f32 1e-12, %v408_v13  ;;  %v704_v19 = vpop.eup %703  ;;  %v493_v12 = vadd.f32 %v1056_v11, %v470_v14  ;;  %v455_v22 = vmul.f32 %v702_v15, %v1016_v20 }
 0x277   :  { %v498_v23 = vadd.f32 %v1056_v11, %v475_v17  ;;  %v446_v6 = vmul.f32 %v704_v19, %v1011_v16 }
 0x278   :  { %713 = vrsqrt.f32 %v424_v18  ;;  %509 = vst [vmem:[#allocation8 + $0x28] sm:$0xff] %v493_v12  ;;  %v478_v45 = vmul.f32 %v1050_v4, %v455_v22 }
 0x279   :  { %v706_v25 = vpop.eup %705  ;;  %514 = vst [vmem:[#allocation8 + $0x50] sm:$0xff] %v498_v23  ;;  %v469_v26 = vmul.f32 %v1050_v4, %v446_v6 }
 0x27a   :  { %v708_v24 = vpop.eup %707  ;;  %v501_v28 = vadd.f32 %v1056_v11, %v478_v45  ;;  %v449_v27 = vmul.f32 %v706_v25, %v1026_v29 }
 0x27b   :  { %v492_v31 = vadd.f32 %v1056_v11, %v469_v26  ;;  %v454_v20 = vmul.f32 %v708_v24, %v1019_v21 }
 0x27c   :  { %517 = vst [vmem:[#allocation8 + $0x68] sm:$0xff] %v501_v28  ;;  %v472_v16 = vmul.f32 %v1050_v4, %v449_v27 }
 0x27d   :  { %v710_v30 = vpop.eup %709  ;;  %508 = vst [vmem:[#allocation8 + $0x20] sm:$0xff] %v492_v31  ;;  %v477_v33 = vmul.f32 %v1050_v4, %v454_v20 }
 0x27e   :  { %v712_v34 = vpop.eup %711  ;;  %v495_v37 = vadd.f32 %v1056_v11, %v472_v16  ;;  %v457_v42 = vmul.f32 %v710_v30, %v1036_v38 }
 0x27f   :  { %v500_v36 = vadd.f32 %v1056_v11, %v477_v33  ;;  %v448_v29 = vmul.f32 %v712_v34, %v1031_v32 }
 0x280   :  { %511 = vst [vmem:[#allocation8 + $0x38] sm:$0xff] %v495_v37  ;;  %v480_v48 = vmul.f32 %v1050_v4, %v457_v42 }
 0x281   :  { %516 = vst [vmem:[#allocation8 + $0x60] sm:$0xff] %v500_v36  ;;  %v471_v40 = vmul.f32 %v1050_v4, %v448_v29 }
 0x282   :  { %v714_v21 = vpop.eup %713  ;;  %v503_v43 = vadd.f32 %v1056_v11, %v480_v48 }
 0x283   :  { %v456_v54 = vmul.f32 %v714_v21, %v1039_v35  ;;  %v494_v39 = vadd.f32 %v1056_v11, %v471_v40 }
 0x284   :  { %519 = vst [vmem:[#allocation8 + $0x78] sm:$0xff] %v503_v43 }
 0x285   :  { %v479_v38 = vmul.f32 %v1050_v4, %v456_v54  ;;  %510 = vst [vmem:[#allocation8 + $0x30] sm:$0xff] %v494_v39 }
 0x287   :  { %v502_v32 = vadd.f32 %v1056_v11, %v479_v38 }
 0x289   :  { %518 = vst [vmem:[#allocation8 + $0x70] sm:$0xff] %v502_v32 }
 0x28a   :  { %792 = shalt.err (!%p789_p0)
}
 0x28b   :  { %s793_s18 = scalar_lea.hbm %s1126_s6, 2048 }
 0x28c   :  { %p794_p1 = scmp.ne.s32.totalorder %s1126_s6, %s793_s18  ;;  %p797_p2 = scmp.lt.u32.totalorder %s793_s18, %s1126_s6 }
 0x28e   :  { %p799_p3 = pnand %p797_p2, %p794_p1 }
 0x290   :  { %802 = shalt.err (!%p799_p3)
}
 0x291   :  { %531 = dma.vmem_to_hbm [thread:$0]  %s526_s5, 2048, %s1126_s6, [#allocation4], %s811_s9, %s811_s9, %s812_s10  }
 0x292   :  { %807 = dma.done.wait [#allocation4], 2048  }
 0x293   :  { %808 = vsyncadd [#allocation4], 4294965248 }
 0x294   :  { %535 = vsyncpa [#allocation3], 1 }
 0x295   :  { %536 = vsyncpa [#allocation6], 1 }
 0x296   :  { %537 = vsyncpa [#allocation4], 1 }

</bundles_post_ra>
